<compile_context>
chip_gen: v5e
topology: v5e:2x2
jax: 0.10.0
libtpu: 0.0.40
codegen_flags: <defaults>
</compile_context>

<pallas_src>
import math
from functools import partial

import jax
import jax.numpy as jnp
from jax import lax
from jax.experimental import pallas as pl
from jax.experimental.pallas import tpu as pltpu


def _round_up(n, m):
    return ((n + m - 1) // m) * m


# --------------------------------------------------------------------------
# Pallas kernel: fused (patch-rows @ conv-weight) * bn_scale + bn_shift, ReLU
# --------------------------------------------------------------------------
def _proj_bn_relu_kernel(x_ref, w_ref, bn_ref, o_ref):
    # x_ref:  (TM, K)   im2col patch rows (bf16/f32), streamed over the grid
    # w_ref:  (K, Ep)   conv weight as matmul operand, resident (Buffered(1))
    # bn_ref: (2, Ep)   row 0 = folded BN scale, row 1 = folded BN shift (f32)
    # o_ref:  (TM, Ep)  lane-dense output tile
    acc = jnp.dot(x_ref[...], w_ref[...], preferred_element_type=jnp.float32)
    bn = bn_ref[...]
    y = acc * bn[0:1, :] + bn[1:2, :]                       # eval-mode BN
    o_ref[...] = jnp.maximum(y, 0.0).astype(o_ref.dtype)    # ReLU


# --------------------------------------------------------------------------
# Patch extraction for kernel_size=3, stride=2, padding=1 — one fused XLA op.
# Output feature order is (c, kd, kh, kw), matching conv_w.reshape(E, C*27).
# --------------------------------------------------------------------------
def _extract_patches_k3_s2_p1(x):
    B, C, D, H, W = x.shape
    patches = lax.conv_general_dilated_patches(
        x,
        filter_shape=(3, 3, 3),
        window_strides=(2, 2, 2),
        padding=((1, 1), (1, 1), (1, 1)),
        dimension_numbers=("NCDHW", "OIDHW", "NDHWC"),
    )                                            # (B, Do, Ho, Wo, C*27)
    Do, Ho, Wo = patches.shape[1:4]
    # Contiguous reshape -> free bitcast into (M, K) token rows.
    return patches.reshape(B * Do * Ho * Wo, C * 27), (Do, Ho, Wo)


def _pick_tile_m(M, max_tm):
    """Largest multiple-of-8 divisor of M that is <= max_tm (so Mp == M)."""
    cap = min(max_tm, M)
    cap -= cap % 8
    for tm in range(cap, 0, -8):
        if M % tm == 0:
            return tm, False
    # No usable divisor: fall back to padding M (rows sliced off afterwards).
    return min(max_tm, _round_up(M, 8)), True


# --------------------------------------------------------------------------
# Wrapper
# --------------------------------------------------------------------------
@partial(jax.jit, static_argnames=("eps", "max_tile_m"))
def _patch_embed_tokens(x, conv_w, gamma, beta, running_mean, running_var,
                        *, eps, max_tile_m):
    B, C, D, H, W = x.shape
    E = conv_w.shape[0]

    x_col, (Do, Ho, Wo) = _extract_patches_k3_s2_p1(x)
    M, K = x_col.shape

    # PyTorch conv weight (E, C, 3, 3, 3) -> (K, E); K ordered (c, kd, kh, kw)
    # to match the patch feature order above.  K stays UNPADDED (27 for C=1).
    w2d = conv_w.reshape(E, K).T

    # Fold eval-mode BatchNorm into per-channel scale/shift; one (2, E) f32 op.
    scale = gamma.astype(jnp.float32) * lax.rsqrt(
        running_var.astype(jnp.float32) + eps)
    shift = beta.astype(jnp.float32) - running_mean.astype(jnp.float32) * scale
    bn = jnp.stack([scale, shift], axis=0)

    # Lane-dense output: pad E to a multiple of 128 (no-op when E already is,
    # as in every MiT stage where embed_dim is a multiple of 128).
    Ep = _round_up(E, 128)
    if Ep != E:
        w2d = jnp.pad(w2d, ((0, 0), (0, Ep - E)))
        bn = jnp.pad(bn, ((0, 0), (0, Ep - E)))

    # Row tiling: prefer tm | M so no pad pass and no output-slice pass.
    tm, needs_pad = _pick_tile_m(M, max_tile_m)
    Mp = _round_up(M, tm) if needs_pad else M
    if needs_pad:
        x_col = jnp.pad(x_col, ((0, Mp - M), (0, 0)))

    # VMEM budget from the actual tile footprint (+headroom), v7x-safe cap.
    xb = x_col.dtype.itemsize
    tile_bytes = (2 * tm * K * xb                       # x tile, double-buffered
                  + K * Ep * w2d.dtype.itemsize         # weight, single-buffered
                  + 2 * Ep * 4                          # BN scale/shift
                  + 2 * tm * Ep * xb)                   # out tile, double-buffered
    vmem_limit = int(min(max(tile_bytes * 1.5 + (2 << 20), 8 << 20), 32 << 20))

    out = pl.pallas_call(
        _proj_bn_relu_kernel,
        out_shape=jax.ShapeDtypeStruct((Mp, Ep), x.dtype),
        grid_spec=pltpu.PrefetchScalarGridSpec(
            num_scalar_prefetch=0,
            grid=(Mp // tm,),
            in_specs=[
                # Patch rows: streamed, block = (tm, full K) — no K padding.
                pl.BlockSpec((tm, K), lambda i: (i, 0)),
                # Conv weight: constant index_map -> weight-stationary,
                # single-buffered to halve resident VMEM.
                pl.BlockSpec((K, Ep), lambda i: (0, 0),
                             pipeline_mode=pl.Buffered(1)),
                # Folded BN scale/shift, one tiny resident operand.
                pl.BlockSpec((2, Ep), lambda i: (0, 0),
                             pipeline_mode=pl.Buffered(1)),
            ],
            out_specs=pl.BlockSpec((tm, Ep), lambda i: (i, 0)),
        ),
        compiler_params=pltpu.CompilerParams(
            # NOTE(v7x): verify in xprof that this single parallel axis shards
            # across both TensorCores; real MiT shapes give Mp//tm >> 2 steps.
            dimension_semantics=("parallel",),
            vmem_limit_bytes=vmem_limit,
        ),
    )(x_col, w2d, bn)

    if needs_pad or Ep != E:
        # Pad rows went through shift+ReLU and hold garbage -> must slice.
        out = out[:M, :E]
    return out.reshape(B, Do * Ho * Wo, E)


def patch_embed_3d_pallas(x, conv_w, gamma, beta, running_mean, running_var,
                          *, patch_size=(2, 2, 2), eps=1e-5, max_tile_m=1024):
    """Forward of PatchEmbed3D: returns (tokens (B, N, E), output_size)."""
    B, C, D, H, W = x.shape
    tokens = _patch_embed_tokens(x, conv_w, gamma, beta,
                                 running_mean, running_var,
                                 eps=eps, max_tile_m=max_tile_m)
    # Mirror the original module's returned tuple exactly (floor division and
    # patch_size[1] reused for the W axis, as in the PyTorch code).
    out_size = (D // patch_size[0], H // patch_size[1], W // patch_size[1])
    return tokens, out_size


# --------------------------------------------------------------------------
# Pure-JAX reference (f32 conv + BN + ReLU, flatten(2).transpose(1, 2))
# --------------------------------------------------------------------------
def _reference_patch_embed(x, conv_w, gamma, beta, running_mean, running_var,
                           *, eps=1e-5):
    xf = x.astype(jnp.float32)
    wf = conv_w.astype(jnp.float32)
    y = lax.conv_general_dilated(
        xf, wf, window_strides=(2, 2, 2),
        padding=((1, 1), (1, 1), (1, 1)),
        dimension_numbers=("NCDHW", "OIDHW", "NCDHW"))
    inv = lax.rsqrt(running_var + eps)
    y = (y - running_mean[None, :, None, None, None]) \
        * inv[None, :, None, None, None]
    y = y * gamma[None, :, None, None, None] + beta[None, :, None, None, None]
    y = jnp.maximum(y, 0.0)
    B, E = y.shape[0], y.shape[1]
    return y.reshape(B, E, -1).transpose(0, 2, 1)


if __name__ == "__main__":
    # Small shapes consistent with the module (stride-2 patchify, in_chans=1).
    B, C_in, D, H, W = 2, 1, 8, 16, 16
    embed_dim = 128                 # lane-dense (multiple of 128)
    patch_size = (2, 2, 2)          # matches the stride-2 conv downsampling

    key = jax.random.PRNGKey(0)
    kx, kw, kg, kb, km, kv = jax.random.split(key, 6)

    # bf16 MXU operands (matmul inputs), f32 BN parameters.
    x = jax.random.normal(kx, (B, C_in, D, H, W), jnp.float32).astype(jnp.bfloat16)
    lim = 1.0 / math.sqrt(C_in * 27)
    conv_w = jax.random.uniform(kw, (embed_dim, C_in, 3, 3, 3), jnp.float32,
                                -lim, lim).astype(jnp.bfloat16)
    gamma = jax.random.uniform(kg, (embed_dim,), jnp.float32, 0.5, 1.5)
    beta = 0.1 * jax.random.normal(kb, (embed_dim,), jnp.float32)
    r_mean = 0.1 * jax.random.normal(km, (embed_dim,), jnp.float32)
    r_var = jax.random.uniform(kv, (embed_dim,), jnp.float32, 0.5, 1.5)

    tokens, out_size = patch_embed_3d_pallas(
        x, conv_w, gamma, beta, r_mean, r_var,
        patch_size=patch_size, eps=1e-5, max_tile_m=1024)
    tokens = jax.block_until_ready(tokens)

    ref = _reference_patch_embed(x, conv_w, gamma, beta, r_mean, r_var, eps=1e-5)

    Do, Ho, Wo = (D + 1) // 2, (H + 1) // 2, (W + 1) // 2
    assert tokens.shape == (B, Do * Ho * Wo, embed_dim), tokens.shape
    assert out_size == (D // patch_size[0], H // patch_size[1], W // patch_size[1])

    diff = jnp.max(jnp.abs(tokens.astype(jnp.float32) - ref))
    assert jnp.allclose(tokens.astype(jnp.float32), ref, atol=5e-2, rtol=5e-2), \
        f"mismatch vs reference, max abs diff {diff}"

    print("KERNEL_OK")
</pallas_src>

<mosaic_0001>
module attributes {stable_mosaic.version = 11 : i64} {
  func.func @_proj_bn_relu_kernel(%arg0: i32, %arg1: memref<512x27xbf16, #tpu.memory_space<vmem>>, %arg2: memref<27x128xbf16, #tpu.memory_space<vmem>>, %arg3: memref<2x128xf32, #tpu.memory_space<vmem>>, %arg4: memref<512x128xbf16, #tpu.memory_space<vmem>>) attributes {dimension_semantics = [#tpu.dimension_semantics<parallel>], iteration_bounds = array<i64: 1>, scalar_prefetch = 0 : i64, scratch_operands = 0 : i64, tpu.core_type = #tpu.core_type<tc>, window_params = [{transform_indices = @transform_0, window_bounds = array<i64: 512, 27>}, {pipeline_mode = #tpu.pipeline_mode<synchronous>, transform_indices = @transform_1, window_bounds = array<i64: 27, 128>}, {pipeline_mode = #tpu.pipeline_mode<synchronous>, transform_indices = @transform_2, window_bounds = array<i64: 2, 128>}, {transform_indices = @transform_3, window_bounds = array<i64: 512, 128>}]} {
    %c0 = arith.constant 0 : index
    %c0_0 = arith.constant 0 : index
    %0 = vector.load %arg1[%c0, %c0_0] : memref<512x27xbf16, #tpu.memory_space<vmem>>, vector<512x27xbf16>
    %c0_1 = arith.constant 0 : index
    %c0_2 = arith.constant 0 : index
    %1 = vector.load %arg2[%c0_1, %c0_2] : memref<27x128xbf16, #tpu.memory_space<vmem>>, vector<27x128xbf16>
    %cst = arith.constant dense<0.000000e+00> : vector<512x128xf32>
    %2 = tpu.matmul %0, %1, %cst {dimension_numbers = #tpu.dot_dimension_numbers<[1], [0], [0], [1], [0, 0, 1, 1], [], []>} : vector<512x27xbf16>, vector<27x128xbf16>, vector<512x128xf32> -> vector<512x128xf32>
    %c0_3 = arith.constant 0 : index
    %c0_4 = arith.constant 0 : index
    %3 = vector.load %arg3[%c0_3, %c0_4] : memref<2x128xf32, #tpu.memory_space<vmem>>, vector<2x128xf32>
    %4 = vector.extract_strided_slice %3 {offsets = [0, 0], sizes = [1, 128], strides = [1, 1]} : vector<2x128xf32> to vector<1x128xf32>
    %5 = vector.broadcast %4 : vector<1x128xf32> to vector<512x128xf32>
    %6 = arith.mulf %2, %5 : vector<512x128xf32>
    %7 = vector.extract_strided_slice %3 {offsets = [1, 0], sizes = [1, 128], strides = [1, 1]} : vector<2x128xf32> to vector<1x128xf32>
    %8 = vector.broadcast %7 : vector<1x128xf32> to vector<512x128xf32>
    %9 = arith.addf %6, %8 : vector<512x128xf32>
    %cst_5 = arith.constant 0.000000e+00 : f32
    %10 = vector.broadcast %cst_5 : f32 to vector<512x128xf32>
    %11 = arith.maximumf %9, %10 : vector<512x128xf32>
    %12 = arith.truncf %11 : vector<512x128xf32> to vector<512x128xbf16>
    %c0_6 = arith.constant 0 : index
    %c0_7 = arith.constant 0 : index
    %13 = vector.load %arg4[%c0_6, %c0_7] : memref<512x128xbf16, #tpu.memory_space<vmem>>, vector<512x128xbf16>
    tpu.vector_store %arg4[%c0_6, %c0_7], %12 {strides = array<i32>} : memref<512x128xbf16, #tpu.memory_space<vmem>>, vector<512x128xbf16>,
    return
  }
  func.func @transform_0(%arg0: i32) -> (i32, i32) {
    %c0_i32 = arith.constant 0 : i32
    %c0_i32_0 = arith.constant 0 : i32
    return %arg0, %c0_i32 : i32, i32
  }
  func.func @transform_1(%arg0: i32) -> (i32, i32) {
    %c0_i32 = arith.constant 0 : i32
    %c0_i32_0 = arith.constant 0 : i32
    %c0_i32_1 = arith.constant 0 : i32
    return %c0_i32, %c0_i32_0 : i32, i32
  }
  func.func @transform_2(%arg0: i32) -> (i32, i32) {
    %c0_i32 = arith.constant 0 : i32
    %c0_i32_0 = arith.constant 0 : i32
    %c0_i32_1 = arith.constant 0 : i32
    return %c0_i32, %c0_i32_0 : i32, i32
  }
  func.func @transform_3(%arg0: i32) -> (i32, i32) {
    %c0_i32 = arith.constant 0 : i32
    %c0_i32_0 = arith.constant 0 : i32
    return %arg0, %c0_i32 : i32, i32
  }
}

</mosaic_0001>

<bundles_post_ra>
// kernel: _patch_embed_tokens.1
= control target key start
LH: loop header
LB: loop body
LE: loop exit
PB: predicated region body
PF: predicated region fallthrough
CT: control target
= control target key end

     0   :  { %vm352_vm0 = vcmask 1044480   ;;  %vm353_vm1 = vcmask 1045504   ;;  %v1298_v3 = vmov 65535   ;;  %s1597_s0 = inlined_call_operand.vmem [shape: bf16[512,27], index: 0, kind: input, shape index: {}]   ;;  %s1598_s1 = inlined_call_operand.vmem [shape: bf16[27,128], index: 1, kind: input, shape index: {}]   ;;  %s1599_s2 = inlined_call_operand.vmem [shape: f32[2,128], index: 2, kind: input, shape index: {}]   ;;  %s1600_s3 = inlined_call_operand.hbm [shape: bf16[512,128], index: 3, kind: output, shape index: {}]  }
   0x1   :  { %v1003_v0 = vld [vmem:[%s1598_s1 + $0x8] sm:$0xf]  ;;  %v1070_v1 = vld [vmem:[%s1598_s1 + $0x8] sm:$0x30]  ;;  %v354_v4 = vsel %vm352_vm0, 4294967295, %v1298_v3 }
   0x2   :  { %v1004_v2 = vor.u32 %v1070_v1, %v1003_v0  ;;  %v355_v5 = vsel %vm353_vm1, %v354_v4, 0 }
   0x4   :  { %v357_v6 = vand.u32 %v1004_v2, %v355_v5 }
   0x5   :  { %8 = vsyncpa [#allocation3], 0  ;;  %v1069_v7 = vld [vmem:[%s1598_s1] sm:$0xff]  ;;  %vm255_vm2 = vcmask 220160   ;;  %v1038_v12 = vld [vmem:[%s1597_s0 + $0x8] sm:$0xff]  ;;  %s857_s29 = sshll.u32 %s1600_s3, 4  ;;  %s858_s29 = int_to_ptr.hbm [resolvable:$true] %s857_s29 }
   0x6   :  { %365 = vmatpush.bf16.msra.mxu0 %v357_v6  ;;  %1262 = vmatpush.bf16.msra.mxu1 %v357_v6  ;;  %v1037_v8 = vld [vmem:[%s1597_s0] sm:$0xff]  ;;  %v1046_v13 = vld [vmem:[%s1597_s0 + $0x48] sm:$0xff]  ;;  %v1039_v16 = vld [vmem:[%s1597_s0 + $0x10] sm:$0xff]  ;;  %s1300_s30 = smov 64   ;;  %s1301_s4 = smov 4  }
   0x7   :  { %1263 = vmatpush.bf16.msra.mxu2 %v357_v6  ;;  %1264 = vmatpush.bf16.msra.mxu3 %v357_v6  ;;  %v1045_v9 = vld [vmem:[%s1597_s0 + $0x40] sm:$0xff]  ;;  %v1054_v14 = vld [vmem:[%s1597_s0 + $0x88] sm:$0xff]  ;;  %v1047_v17 = vld [vmem:[%s1597_s0 + $0x50] sm:$0xff] }
   0x8   :  { %v1053_v10 = vld [vmem:[%s1597_s0 + $0x80] sm:$0xff]  ;;  %v1062_v15 = vld [vmem:[%s1597_s0 + $0xc8] sm:$0xff]  ;;  %v1055_v18 = vld [vmem:[%s1597_s0 + $0x90] sm:$0xff] }
   0x9   :  { %v1061_v11 = vld [vmem:[%s1597_s0 + $0xc0] sm:$0xff]  ;;  %v1063_v19 = vld [vmem:[%s1597_s0 + $0xd0] sm:$0xff]  ;;  %v1040_v20 = vld [vmem:[%s1597_s0 + $0x18] sm:$0xff] }
   0xa   :  { %366 = vmatpush.bf16.msra.mxu0 %v1069_v7  ;;  %1265 = vmatpush.bf16.msra.mxu1 %v1069_v7  ;;  %v1048_v21 = vld [vmem:[%s1597_s0 + $0x58] sm:$0xff]  ;;  %v1041_v24 = vld [vmem:[%s1597_s0 + $0x20] sm:$0xff]  ;;  %v1042_v28 = vld [vmem:[%s1597_s0 + $0x28] sm:$0xff] }
   0xb   :  { %1266 = vmatpush.bf16.msra.mxu2 %v1069_v7  ;;  %1267 = vmatpush.bf16.msra.mxu3 %v1069_v7  ;;  %v1056_v22 = vld [vmem:[%s1597_s0 + $0x98] sm:$0xff]  ;;  %v1049_v25 = vld [vmem:[%s1597_s0 + $0x60] sm:$0xff]  ;;  %v1050_v29 = vld [vmem:[%s1597_s0 + $0x68] sm:$0xff] }
   0xc   :  { %v1064_v23 = vld [vmem:[%s1597_s0 + $0xd8] sm:$0xff]  ;;  %v1057_v26 = vld [vmem:[%s1597_s0 + $0xa0] sm:$0xff]  ;;  %v1058_v30 = vld [vmem:[%s1597_s0 + $0xa8] sm:$0xff] }
   0xd   :  { %1005 = vmatmul.msk.bf16.vlgmr.msra.gmra.mxu0 %vm255_vm2, %v1037_v8  ;;  %1013 = vmatmul.msk.bf16.vlgmr.msra.gmra.mxu1 %vm255_vm2, %v1045_v9  ;;  %v1065_v27 = vld [vmem:[%s1597_s0 + $0xe0] sm:$0xff]  ;;  %v1066_v31 = vld [vmem:[%s1597_s0 + $0xe8] sm:$0xff]  ;;  %v1043_v32 = vld [vmem:[%s1597_s0 + $0x30] sm:$0xff] }
   0xe   :  { %1021 = vmatmul.msk.bf16.vlgmr.msra.gmra.mxu2 %vm255_vm2, %v1053_v10  ;;  %1029 = vmatmul.msk.bf16.vlgmr.msra.gmra.mxu3 %vm255_vm2, %v1061_v11  ;;  %v1051_v33 = vld [vmem:[%s1597_s0 + $0x70] sm:$0xff]  ;;  %v1044_v36 = vld [vmem:[%s1597_s0 + $0x38] sm:$0xff]  ;;  %v528_v40 = vld [vmem:[%s1599_s2] sm:$0x3] }
   0xf   :  { %v1059_v34 = vld [vmem:[%s1597_s0 + $0xb0] sm:$0xff]  ;;  %v1052_v37 = vld [vmem:[%s1597_s0 + $0x78] sm:$0xff]  ;;  %v1462_v43 = vperm.slane %v528_v40, 0  ;;  %v1465_v45 = vperm.slane %v528_v40, 1 }
  0x10   :  { %v1067_v35 = vld [vmem:[%s1597_s0 + $0xf0] sm:$0xff]  ;;  %v1060_v38 = vld [vmem:[%s1597_s0 + $0xb8] sm:$0xff] }
  0x11   :  { %v1068_v39 = vld [vmem:[%s1597_s0 + $0xf8] sm:$0xff]  ;;  %s1299_s0 = smov [#allocation2]  }
  0x12   :  { %s855_s2 = sshll.u32 %s1299_s0, 4  ;;  %s856_s2 = int_to_ptr.vmem [resolvable:$true] %s855_s2 }
  0x1d   :  { %1006 = vmatmul.msk.bf16.gmra.mxu0 %vm255_vm2, %v1038_v12  ;;  %1014 = vmatmul.msk.bf16.gmra.mxu1 %vm255_vm2, %v1046_v13 }
  0x1e   :  { %1022 = vmatmul.msk.bf16.gmra.mxu2 %vm255_vm2, %v1054_v14  ;;  %1030 = vmatmul.msk.bf16.gmra.mxu3 %vm255_vm2, %v1062_v15 }
  0x2d   :  { %1007 = vmatmul.msk.bf16.gmra.mxu0 %vm255_vm2, %v1039_v16  ;;  %1015 = vmatmul.msk.bf16.gmra.mxu1 %vm255_vm2, %v1047_v17 }
  0x2e   :  { %1023 = vmatmul.msk.bf16.gmra.mxu2 %vm255_vm2, %v1055_v18  ;;  %1031 = vmatmul.msk.bf16.gmra.mxu3 %vm255_vm2, %v1063_v19 }
  0x3d   :  { %1008 = vmatmul.msk.bf16.gmra.mxu0 %vm255_vm2, %v1040_v20  ;;  %1016 = vmatmul.msk.bf16.gmra.mxu1 %vm255_vm2, %v1048_v21 }
  0x3e   :  { %1024 = vmatmul.msk.bf16.gmra.mxu2 %vm255_vm2, %v1056_v22  ;;  %1032 = vmatmul.msk.bf16.gmra.mxu3 %vm255_vm2, %v1064_v23 }
  0x4d   :  { %1009 = vmatmul.msk.bf16.gmra.mxu0 %vm255_vm2, %v1041_v24  ;;  %1017 = vmatmul.msk.bf16.gmra.mxu1 %vm255_vm2, %v1049_v25 }
  0x4e   :  { %1025 = vmatmul.msk.bf16.gmra.mxu2 %vm255_vm2, %v1057_v26  ;;  %1033 = vmatmul.msk.bf16.gmra.mxu3 %vm255_vm2, %v1065_v27 }
  0x5d   :  { %1010 = vmatmul.msk.bf16.gmra.mxu0 %vm255_vm2, %v1042_v28  ;;  %1018 = vmatmul.msk.bf16.gmra.mxu1 %vm255_vm2, %v1050_v29 }
  0x5e   :  { %1026 = vmatmul.msk.bf16.gmra.mxu2 %vm255_vm2, %v1058_v30  ;;  %1034 = vmatmul.msk.bf16.gmra.mxu3 %vm255_vm2, %v1066_v31 }
  0x6d   :  { %1011 = vmatmul.msk.bf16.gmra.mxu0 %vm255_vm2, %v1043_v32  ;;  %1019 = vmatmul.msk.bf16.gmra.mxu1 %vm255_vm2, %v1051_v33 }
  0x6e   :  { %1027 = vmatmul.msk.bf16.gmra.mxu2 %vm255_vm2, %v1059_v34  ;;  %1035 = vmatmul.msk.bf16.gmra.mxu3 %vm255_vm2, %v1067_v35 }
  0x7d   :  { %1012 = vmatmul.msk.bf16.gmra.mxu0 %vm255_vm2, %v1044_v36  ;;  %1020 = vmatmul.msk.bf16.gmra.mxu1 %vm255_vm2, %v1052_v37 }
  0x7e   :  { %1028 = vmatmul.msk.bf16.gmra.mxu2 %vm255_vm2, %v1060_v38  ;;  %1036 = vmatmul.msk.bf16.gmra.mxu3 %vm255_vm2, %v1068_v39 }
  0x8a   :  { %v368_v41 = vpop.f32.mrf.mxu0  ;;  %v408_v42 = vpop.f32.mrf.mxu1 }
  0x8b   :  { %v530_v44 = vmul.f32 %v1462_v43, %v368_v41  ;;  %v546_v46 = vmul.f32 %v1462_v43, %v408_v42 }
  0x8d   :  { %v595_v51 = vadd.f32 %v1465_v45, %v530_v44  ;;  %v611_v52 = vadd.f32 %v1465_v45, %v546_v46 }
  0x8f   :  { %v659_v59 = vmax.f32 %v595_v51, 0.0  ;;  %v675_v60 = vmax.f32 %v611_v52, 0.0 }
  0x91   :  { %v448_v47 = vpop.f32.mrf.mxu2  ;;  %v488_v48 = vpop.f32.mrf.mxu3 }
  0x92   :  { %v370_v49 = vpop.f32.mrf.mxu0  ;;  %v410_v50 = vpop.f32.mrf.mxu1  ;;  %v562_v57 = vmul.f32 %v1462_v43, %v448_v47  ;;  %v578_v58 = vmul.f32 %v1462_v43, %v488_v48 }
  0x93   :  { %v531_v53 = vmul.f32 %v1462_v43, %v370_v49  ;;  %v547_v54 = vmul.f32 %v1462_v43, %v410_v50 }
  0x94   :  { %v627_v3 = vadd.f32 %v1465_v45, %v562_v57  ;;  %v643_v4 = vadd.f32 %v1465_v45, %v578_v58 }
  0x95   :  { %v596_v55 = vadd.f32 %v1465_v45, %v531_v53  ;;  %v612_v56 = vadd.f32 %v1465_v45, %v547_v54 }
  0x96   :  { %v691_v11 = vmax.f32 %v627_v3, 0.0  ;;  %v707_v12 = vmax.f32 %v643_v4, 0.0 }
  0x97   :  { %v660_v61 = vmax.f32 %v596_v55, 0.0  ;;  %v676_v62 = vmax.f32 %v612_v56, 0.0 }
  0x99   :  { %v1074_v63 = vpack.c.bf16 %v660_v61, %v659_v59  ;;  %v1114_v0 = vpack.c.bf16 %v676_v62, %v675_v60  ;;  %v450_v1 = vpop.f32.mrf.mxu2  ;;  %v490_v2 = vpop.f32.mrf.mxu3 }
  0x9a   :  { %v563_v5 = vmul.f32 %v1462_v43, %v450_v1  ;;  %v579_v6 = vmul.f32 %v1462_v43, %v490_v2  ;;  %v373_v7 = vpop.f32.mrf.mxu0  ;;  %v413_v8 = vpop.f32.mrf.mxu1 }
  0x9b   :  { %1075 = vst [vmem:[#allocation2] sm:$0xff] %v1074_v63   ;;  %v532_v15 = vmul.f32 %v1462_v43, %v373_v7  ;;  %v548_v16 = vmul.f32 %v1462_v43, %v413_v8 }
  0x9c   :  { %1238 = vst [vmem:[#allocation2 + $0x40] sm:$0xff] %v1114_v0   ;;  %v628_v9 = vadd.f32 %v1465_v45, %v563_v5  ;;  %v644_v10 = vadd.f32 %v1465_v45, %v579_v6 }
  0x9d   :  { %v597_v23 = vadd.f32 %v1465_v45, %v532_v15  ;;  %v613_v24 = vadd.f32 %v1465_v45, %v548_v16 }
  0x9e   :  { %v692_v13 = vmax.f32 %v628_v9, 0.0  ;;  %v708_v14 = vmax.f32 %v644_v10, 0.0 }
  0x9f   :  { %v661_v31 = vmax.f32 %v597_v23, 0.0  ;;  %v677_v32 = vmax.f32 %v613_v24, 0.0 }
  0xa0   :  { %v1154_v17 = vpack.c.bf16 %v692_v13, %v691_v11  ;;  %v1194_v18 = vpack.c.bf16 %v708_v14, %v707_v12 }
  0xa1   :  { %v453_v19 = vpop.f32.mrf.mxu2  ;;  %v493_v20 = vpop.f32.mrf.mxu3 }
  0xa2   :  { %1246 = vst [vmem:[#allocation2 + $0x80] sm:$0xff] %v1154_v17   ;;  %v375_v21 = vpop.f32.mrf.mxu0  ;;  %v415_v22 = vpop.f32.mrf.mxu1  ;;  %v564_v29 = vmul.f32 %v1462_v43, %v453_v19  ;;  %v580_v30 = vmul.f32 %v1462_v43, %v493_v20 }
  0xa3   :  { %1254 = vst [vmem:[#allocation2 + $0xc0] sm:$0xff] %v1194_v18   ;;  %v533_v25 = vmul.f32 %v1462_v43, %v375_v21  ;;  %v549_v26 = vmul.f32 %v1462_v43, %v415_v22 }
  0xa4   :  { %v629_v39 = vadd.f32 %v1465_v45, %v564_v29  ;;  %v645_v40 = vadd.f32 %v1465_v45, %v580_v30 }
  0xa5   :  { %v598_v27 = vadd.f32 %v1465_v45, %v533_v25  ;;  %v614_v28 = vadd.f32 %v1465_v45, %v549_v26 }
  0xa6   :  { %v693_v49 = vmax.f32 %v629_v39, 0.0  ;;  %v709_v50 = vmax.f32 %v645_v40, 0.0 }
  0xa7   :  { %v662_v33 = vmax.f32 %v598_v27, 0.0  ;;  %v678_v34 = vmax.f32 %v614_v28, 0.0 }
  0xa9   :  { %v1079_v35 = vpack.c.bf16 %v662_v33, %v661_v31  ;;  %v1119_v36 = vpack.c.bf16 %v678_v34, %v677_v32  ;;  %v455_v37 = vpop.f32.mrf.mxu2  ;;  %v495_v38 = vpop.f32.mrf.mxu3 }
  0xaa   :  { %v565_v41 = vmul.f32 %v1462_v43, %v455_v37  ;;  %v581_v42 = vmul.f32 %v1462_v43, %v495_v38  ;;  %v378_v44 = vpop.f32.mrf.mxu0  ;;  %v418_v46 = vpop.f32.mrf.mxu1 }
  0xab   :  { %1231 = vst [vmem:[#allocation2 + $0x8] sm:$0xff] %v1079_v35   ;;  %v534_v53 = vmul.f32 %v1462_v43, %v378_v44  ;;  %v550_v54 = vmul.f32 %v1462_v43, %v418_v46 }
  0xac   :  { %1239 = vst [vmem:[#allocation2 + $0x48] sm:$0xff] %v1119_v36   ;;  %v630_v47 = vadd.f32 %v1465_v45, %v565_v41  ;;  %v646_v48 = vadd.f32 %v1465_v45, %v581_v42 }
  0xad   :  { %v599_v61 = vadd.f32 %v1465_v45, %v534_v53  ;;  %v615_v62 = vadd.f32 %v1465_v45, %v550_v54 }
  0xae   :  { %v694_v51 = vmax.f32 %v630_v47, 0.0  ;;  %v710_v52 = vmax.f32 %v646_v48, 0.0 }
  0xaf   :  { %v663_v5 = vmax.f32 %v599_v61, 0.0  ;;  %v679_v6 = vmax.f32 %v615_v62, 0.0 }
  0xb0   :  { %v1159_v55 = vpack.c.bf16 %v694_v51, %v693_v49  ;;  %v1199_v56 = vpack.c.bf16 %v710_v52, %v709_v50 }
  0xb1   :  { %v458_v57 = vpop.f32.mrf.mxu2  ;;  %v498_v58 = vpop.f32.mrf.mxu3 }
  0xb2   :  { %1247 = vst [vmem:[#allocation2 + $0x88] sm:$0xff] %v1159_v55   ;;  %v380_v59 = vpop.f32.mrf.mxu0  ;;  %v420_v60 = vpop.f32.mrf.mxu1  ;;  %v566_v3 = vmul.f32 %v1462_v43, %v458_v57  ;;  %v582_v4 = vmul.f32 %v1462_v43, %v498_v58 }
  0xb3   :  { %1255 = vst [vmem:[#allocation2 + $0xc8] sm:$0xff] %v1199_v56   ;;  %v535_v63 = vmul.f32 %v1462_v43, %v380_v59  ;;  %v551_v0 = vmul.f32 %v1462_v43, %v420_v60 }
  0xb4   :  { %v631_v13 = vadd.f32 %v1465_v45, %v566_v3  ;;  %v647_v14 = vadd.f32 %v1465_v45, %v582_v4 }
  0xb5   :  { %v600_v1 = vadd.f32 %v1465_v45, %v535_v63  ;;  %v616_v2 = vadd.f32 %v1465_v45, %v551_v0 }
  0xb6   :  { %v695_v21 = vmax.f32 %v631_v13, 0.0  ;;  %v711_v22 = vmax.f32 %v647_v14, 0.0 }
  0xb7   :  { %v664_v7 = vmax.f32 %v600_v1, 0.0  ;;  %v680_v8 = vmax.f32 %v616_v2, 0.0 }
  0xb9   :  { %v1084_v9 = vpack.c.bf16 %v664_v7, %v663_v5  ;;  %v1124_v10 = vpack.c.bf16 %v680_v8, %v679_v6  ;;  %v460_v11 = vpop.f32.mrf.mxu2  ;;  %v500_v12 = vpop.f32.mrf.mxu3 }
  0xba   :  { %v567_v15 = vmul.f32 %v1462_v43, %v460_v11  ;;  %v583_v16 = vmul.f32 %v1462_v43, %v500_v12  ;;  %v383_v17 = vpop.f32.mrf.mxu0  ;;  %v423_v18 = vpop.f32.mrf.mxu1 }
  0xbb   :  { %1232 = vst [vmem:[#allocation2 + $0x10] sm:$0xff] %v1084_v9   ;;  %v536_v25 = vmul.f32 %v1462_v43, %v383_v17  ;;  %v552_v26 = vmul.f32 %v1462_v43, %v423_v18 }
  0xbc   :  { %1240 = vst [vmem:[#allocation2 + $0x50] sm:$0xff] %v1124_v10   ;;  %v632_v19 = vadd.f32 %v1465_v45, %v567_v15  ;;  %v648_v20 = vadd.f32 %v1465_v45, %v583_v16 }
  0xbd   :  { %v601_v33 = vadd.f32 %v1465_v45, %v536_v25  ;;  %v617_v34 = vadd.f32 %v1465_v45, %v552_v26 }
  0xbe   :  { %v696_v23 = vmax.f32 %v632_v19, 0.0  ;;  %v712_v24 = vmax.f32 %v648_v20, 0.0 }
  0xbf   :  { %v665_v41 = vmax.f32 %v601_v33, 0.0  ;;  %v681_v42 = vmax.f32 %v617_v34, 0.0 }
  0xc0   :  { %v1164_v27 = vpack.c.bf16 %v696_v23, %v695_v21  ;;  %v1204_v28 = vpack.c.bf16 %v712_v24, %v711_v22 }
  0xc1   :  { %v463_v29 = vpop.f32.mrf.mxu2  ;;  %v503_v30 = vpop.f32.mrf.mxu3 }
  0xc2   :  { %1248 = vst [vmem:[#allocation2 + $0x90] sm:$0xff] %v1164_v27   ;;  %v385_v31 = vpop.f32.mrf.mxu0  ;;  %v425_v32 = vpop.f32.mrf.mxu1  ;;  %v568_v39 = vmul.f32 %v1462_v43, %v463_v29  ;;  %v584_v40 = vmul.f32 %v1462_v43, %v503_v30 }
  0xc3   :  { %1256 = vst [vmem:[#allocation2 + $0xd0] sm:$0xff] %v1204_v28   ;;  %v537_v35 = vmul.f32 %v1462_v43, %v385_v31  ;;  %v553_v36 = vmul.f32 %v1462_v43, %v425_v32 }
  0xc4   :  { %v633_v51 = vadd.f32 %v1465_v45, %v568_v39  ;;  %v649_v52 = vadd.f32 %v1465_v45, %v584_v40 }
  0xc5   :  { %v602_v37 = vadd.f32 %v1465_v45, %v537_v35  ;;  %v618_v38 = vadd.f32 %v1465_v45, %v553_v36 }
  0xc6   :  { %v697_v59 = vmax.f32 %v633_v51, 0.0  ;;  %v713_v60 = vmax.f32 %v649_v52, 0.0 }
  0xc7   :  { %v666_v44 = vmax.f32 %v602_v37, 0.0  ;;  %v682_v46 = vmax.f32 %v618_v38, 0.0 }
  0xc9   :  { %v1089_v47 = vpack.c.bf16 %v666_v44, %v665_v41  ;;  %v1129_v48 = vpack.c.bf16 %v682_v46, %v681_v42  ;;  %v465_v49 = vpop.f32.mrf.mxu2  ;;  %v505_v50 = vpop.f32.mrf.mxu3 }
  0xca   :  { %v569_v53 = vmul.f32 %v1462_v43, %v465_v49  ;;  %v585_v54 = vmul.f32 %v1462_v43, %v505_v50  ;;  %v388_v55 = vpop.f32.mrf.mxu0  ;;  %v428_v56 = vpop.f32.mrf.mxu1 }
  0xcb   :  { %1233 = vst [vmem:[#allocation2 + $0x18] sm:$0xff] %v1089_v47   ;;  %v538_v63 = vmul.f32 %v1462_v43, %v388_v55  ;;  %v554_v0 = vmul.f32 %v1462_v43, %v428_v56 }
  0xcc   :  { %1241 = vst [vmem:[#allocation2 + $0x58] sm:$0xff] %v1129_v48   ;;  %v634_v57 = vadd.f32 %v1465_v45, %v569_v53  ;;  %v650_v58 = vadd.f32 %v1465_v45, %v585_v54 }
  0xcd   :  { %v603_v7 = vadd.f32 %v1465_v45, %v538_v63  ;;  %v619_v8 = vadd.f32 %v1465_v45, %v554_v0 }
  0xce   :  { %v698_v61 = vmax.f32 %v634_v57, 0.0  ;;  %v714_v62 = vmax.f32 %v650_v58, 0.0 }
  0xcf   :  { %v667_v15 = vmax.f32 %v603_v7, 0.0  ;;  %v683_v16 = vmax.f32 %v619_v8, 0.0 }
  0xd0   :  { %v1169_v1 = vpack.c.bf16 %v698_v61, %v697_v59  ;;  %v1209_v2 = vpack.c.bf16 %v714_v62, %v713_v60 }
  0xd1   :  { %v468_v3 = vpop.f32.mrf.mxu2  ;;  %v508_v4 = vpop.f32.mrf.mxu3 }
  0xd2   :  { %1249 = vst [vmem:[#allocation2 + $0x98] sm:$0xff] %v1169_v1   ;;  %v390_v5 = vpop.f32.mrf.mxu0  ;;  %v430_v6 = vpop.f32.mrf.mxu1  ;;  %v570_v13 = vmul.f32 %v1462_v43, %v468_v3  ;;  %v586_v14 = vmul.f32 %v1462_v43, %v508_v4 }
  0xd3   :  { %1257 = vst [vmem:[#allocation2 + $0xd8] sm:$0xff] %v1209_v2   ;;  %v539_v9 = vmul.f32 %v1462_v43, %v390_v5  ;;  %v555_v10 = vmul.f32 %v1462_v43, %v430_v6 }
  0xd4   :  { %v635_v23 = vadd.f32 %v1465_v45, %v570_v13  ;;  %v651_v24 = vadd.f32 %v1465_v45, %v586_v14 }
  0xd5   :  { %v604_v11 = vadd.f32 %v1465_v45, %v539_v9  ;;  %v620_v12 = vadd.f32 %v1465_v45, %v555_v10 }
  0xd6   :  { %v699_v31 = vmax.f32 %v635_v23, 0.0  ;;  %v715_v32 = vmax.f32 %v651_v24, 0.0 }
  0xd7   :  { %v668_v17 = vmax.f32 %v604_v11, 0.0  ;;  %v684_v18 = vmax.f32 %v620_v12, 0.0 }
  0xd9   :  { %v1094_v19 = vpack.c.bf16 %v668_v17, %v667_v15  ;;  %v1134_v20 = vpack.c.bf16 %v684_v18, %v683_v16  ;;  %v470_v21 = vpop.f32.mrf.mxu2  ;;  %v510_v22 = vpop.f32.mrf.mxu3 }
  0xda   :  { %v571_v25 = vmul.f32 %v1462_v43, %v470_v21  ;;  %v587_v26 = vmul.f32 %v1462_v43, %v510_v22  ;;  %v393_v27 = vpop.f32.mrf.mxu0  ;;  %v433_v28 = vpop.f32.mrf.mxu1 }
  0xdb   :  { %1234 = vst [vmem:[#allocation2 + $0x20] sm:$0xff] %v1094_v19   ;;  %v540_v35 = vmul.f32 %v1462_v43, %v393_v27  ;;  %v556_v36 = vmul.f32 %v1462_v43, %v433_v28 }
  0xdc   :  { %1242 = vst [vmem:[#allocation2 + $0x60] sm:$0xff] %v1134_v20   ;;  %v636_v29 = vadd.f32 %v1465_v45, %v571_v25  ;;  %v652_v30 = vadd.f32 %v1465_v45, %v587_v26 }
  0xdd   :  { %v605_v44 = vadd.f32 %v1465_v45, %v540_v35  ;;  %v621_v46 = vadd.f32 %v1465_v45, %v556_v36 }
  0xde   :  { %v700_v33 = vmax.f32 %v636_v29, 0.0  ;;  %v716_v34 = vmax.f32 %v652_v30, 0.0 }
  0xdf   :  { %v669_v53 = vmax.f32 %v605_v44, 0.0  ;;  %v685_v54 = vmax.f32 %v621_v46, 0.0 }
  0xe0   :  { %v1174_v37 = vpack.c.bf16 %v700_v33, %v699_v31  ;;  %v1214_v38 = vpack.c.bf16 %v716_v34, %v715_v32 }
  0xe1   :  { %v473_v39 = vpop.f32.mrf.mxu2  ;;  %v513_v40 = vpop.f32.mrf.mxu3 }
  0xe2   :  { %1250 = vst [vmem:[#allocation2 + $0xa0] sm:$0xff] %v1174_v37   ;;  %v395_v41 = vpop.f32.mrf.mxu0  ;;  %v435_v42 = vpop.f32.mrf.mxu1  ;;  %v572_v51 = vmul.f32 %v1462_v43, %v473_v39  ;;  %v588_v52 = vmul.f32 %v1462_v43, %v513_v40 }
  0xe3   :  { %1258 = vst [vmem:[#allocation2 + $0xe0] sm:$0xff] %v1214_v38   ;;  %v541_v47 = vmul.f32 %v1462_v43, %v395_v41  ;;  %v557_v48 = vmul.f32 %v1462_v43, %v435_v42 }
  0xe4   :  { %v637_v61 = vadd.f32 %v1465_v45, %v572_v51  ;;  %v653_v62 = vadd.f32 %v1465_v45, %v588_v52 }
  0xe5   :  { %v606_v49 = vadd.f32 %v1465_v45, %v541_v47  ;;  %v622_v50 = vadd.f32 %v1465_v45, %v557_v48 }
  0xe6   :  { %v701_v5 = vmax.f32 %v637_v61, 0.0  ;;  %v717_v6 = vmax.f32 %v653_v62, 0.0 }
  0xe7   :  { %v670_v55 = vmax.f32 %v606_v49, 0.0  ;;  %v686_v56 = vmax.f32 %v622_v50, 0.0 }
  0xe9   :  { %v1099_v57 = vpack.c.bf16 %v670_v55, %v669_v53  ;;  %v1139_v58 = vpack.c.bf16 %v686_v56, %v685_v54  ;;  %v475_v59 = vpop.f32.mrf.mxu2  ;;  %v515_v60 = vpop.f32.mrf.mxu3 }
  0xea   :  { %v573_v63 = vmul.f32 %v1462_v43, %v475_v59  ;;  %v589_v0 = vmul.f32 %v1462_v43, %v515_v60  ;;  %v398_v1 = vpop.f32.mrf.mxu0  ;;  %v438_v2 = vpop.f32.mrf.mxu1 }
  0xeb   :  { %1235 = vst [vmem:[#allocation2 + $0x28] sm:$0xff] %v1099_v57   ;;  %v542_v9 = vmul.f32 %v1462_v43, %v398_v1  ;;  %v558_v10 = vmul.f32 %v1462_v43, %v438_v2 }
  0xec   :  { %1243 = vst [vmem:[#allocation2 + $0x68] sm:$0xff] %v1139_v58   ;;  %v638_v3 = vadd.f32 %v1465_v45, %v573_v63  ;;  %v654_v4 = vadd.f32 %v1465_v45, %v589_v0 }
  0xed   :  { %v607_v17 = vadd.f32 %v1465_v45, %v542_v9  ;;  %v623_v18 = vadd.f32 %v1465_v45, %v558_v10 }
  0xee   :  { %v702_v7 = vmax.f32 %v638_v3, 0.0  ;;  %v718_v8 = vmax.f32 %v654_v4, 0.0 }
  0xef   :  { %v671_v25 = vmax.f32 %v607_v17, 0.0  ;;  %v687_v26 = vmax.f32 %v623_v18, 0.0 }
  0xf0   :  { %v1179_v11 = vpack.c.bf16 %v702_v7, %v701_v5  ;;  %v1219_v12 = vpack.c.bf16 %v718_v8, %v717_v6 }
  0xf1   :  { %v478_v13 = vpop.f32.mrf.mxu2  ;;  %v518_v14 = vpop.f32.mrf.mxu3 }
  0xf2   :  { %1251 = vst [vmem:[#allocation2 + $0xa8] sm:$0xff] %v1179_v11   ;;  %v400_v15 = vpop.f32.mrf.mxu0  ;;  %v440_v16 = vpop.f32.mrf.mxu1  ;;  %v574_v23 = vmul.f32 %v1462_v43, %v478_v13  ;;  %v590_v24 = vmul.f32 %v1462_v43, %v518_v14 }
  0xf3   :  { %1259 = vst [vmem:[#allocation2 + $0xe8] sm:$0xff] %v1219_v12   ;;  %v543_v19 = vmul.f32 %v1462_v43, %v400_v15  ;;  %v559_v20 = vmul.f32 %v1462_v43, %v440_v16 }
  0xf4   :  { %v639_v33 = vadd.f32 %v1465_v45, %v574_v23  ;;  %v655_v34 = vadd.f32 %v1465_v45, %v590_v24 }
  0xf5   :  { %v608_v21 = vadd.f32 %v1465_v45, %v543_v19  ;;  %v624_v22 = vadd.f32 %v1465_v45, %v559_v20 }
  0xf6   :  { %v703_v41 = vmax.f32 %v639_v33, 0.0  ;;  %v719_v42 = vmax.f32 %v655_v34, 0.0 }
  0xf7   :  { %v672_v27 = vmax.f32 %v608_v21, 0.0  ;;  %v688_v28 = vmax.f32 %v624_v22, 0.0 }
  0xf9   :  { %v1104_v29 = vpack.c.bf16 %v672_v27, %v671_v25  ;;  %v1144_v30 = vpack.c.bf16 %v688_v28, %v687_v26  ;;  %v480_v31 = vpop.f32.mrf.mxu2  ;;  %v520_v32 = vpop.f32.mrf.mxu3 }
  0xfa   :  { %v575_v35 = vmul.f32 %v1462_v43, %v480_v31  ;;  %v591_v36 = vmul.f32 %v1462_v43, %v520_v32  ;;  %v403_v37 = vpop.f32.mrf.mxu0  ;;  %v443_v38 = vpop.f32.mrf.mxu1 }
  0xfb   :  { %1236 = vst [vmem:[#allocation2 + $0x30] sm:$0xff] %v1104_v29   ;;  %v544_v47 = vmul.f32 %v1462_v43, %v403_v37  ;;  %v560_v48 = vmul.f32 %v1462_v43, %v443_v38 }
  0xfc   :  { %1244 = vst [vmem:[#allocation2 + $0x70] sm:$0xff] %v1144_v30   ;;  %v640_v39 = vadd.f32 %v1465_v45, %v575_v35  ;;  %v656_v40 = vadd.f32 %v1465_v45, %v591_v36 }
  0xfd   :  { %v609_v55 = vadd.f32 %v1465_v45, %v544_v47  ;;  %v625_v56 = vadd.f32 %v1465_v45, %v560_v48 }
  0xfe   :  { %v704_v44 = vmax.f32 %v640_v39, 0.0  ;;  %v720_v46 = vmax.f32 %v656_v40, 0.0 }
  0xff   :  { %v673_v63 = vmax.f32 %v609_v55, 0.0  ;;  %v689_v0 = vmax.f32 %v625_v56, 0.0 }
 0x100   :  { %v1184_v49 = vpack.c.bf16 %v704_v44, %v703_v41  ;;  %v1224_v50 = vpack.c.bf16 %v720_v46, %v719_v42 }
 0x101   :  { %v483_v51 = vpop.f32.mrf.mxu2  ;;  %v523_v52 = vpop.f32.mrf.mxu3 }
 0x102   :  { %1252 = vst [vmem:[#allocation2 + $0xb0] sm:$0xff] %v1184_v49   ;;  %v405_v53 = vpop.f32.mrf.mxu0  ;;  %v445_v54 = vpop.f32.mrf.mxu1  ;;  %v576_v61 = vmul.f32 %v1462_v43, %v483_v51  ;;  %v592_v62 = vmul.f32 %v1462_v43, %v523_v52 }
 0x103   :  { %1260 = vst [vmem:[#allocation2 + $0xf0] sm:$0xff] %v1224_v50   ;;  %v545_v57 = vmul.f32 %v1462_v43, %v405_v53  ;;  %v561_v58 = vmul.f32 %v1462_v43, %v445_v54 }
 0x104   :  { %v641_v7 = vadd.f32 %v1465_v45, %v576_v61  ;;  %v657_v8 = vadd.f32 %v1465_v45, %v592_v62 }
 0x105   :  { %v610_v59 = vadd.f32 %v1465_v45, %v545_v57  ;;  %v626_v60 = vadd.f32 %v1465_v45, %v561_v58 }
 0x106   :  { %v705_v13 = vmax.f32 %v641_v7, 0.0  ;;  %v721_v14 = vmax.f32 %v657_v8, 0.0 }
 0x107   :  { %v674_v1 = vmax.f32 %v610_v59, 0.0  ;;  %v690_v2 = vmax.f32 %v626_v60, 0.0 }
 0x109   :  { %v1109_v3 = vpack.c.bf16 %v674_v1, %v673_v63  ;;  %v1149_v4 = vpack.c.bf16 %v690_v2, %v689_v0  ;;  %v485_v5 = vpop.f32.mrf.mxu2  ;;  %v525_v6 = vpop.f32.mrf.mxu3 }
 0x10a   :  { %v577_v9 = vmul.f32 %v1462_v43, %v485_v5  ;;  %v593_v10 = vmul.f32 %v1462_v43, %v525_v6 }
 0x10b   :  { %1237 = vst [vmem:[#allocation2 + $0x38] sm:$0xff] %v1109_v3  }
 0x10c   :  { %1245 = vst [vmem:[#allocation2 + $0x78] sm:$0xff] %v1149_v4   ;;  %v642_v11 = vadd.f32 %v1465_v45, %v577_v9  ;;  %v658_v12 = vadd.f32 %v1465_v45, %v593_v10 }
 0x10e   :  { %v706_v15 = vmax.f32 %v642_v11, 0.0  ;;  %v722_v16 = vmax.f32 %v658_v12, 0.0 }
 0x110   :  { %v1189_v17 = vpack.c.bf16 %v706_v15, %v705_v13  ;;  %v1229_v18 = vpack.c.bf16 %v722_v16, %v721_v14 }
 0x112   :  { %1253 = vst [vmem:[#allocation2 + $0xb8] sm:$0xff] %v1189_v17  }
 0x113   :  { %1261 = vst [vmem:[#allocation2 + $0xf8] sm:$0xff] %v1229_v18  }
 0x114   :  { %863 = dma.vmem_to_hbm [thread:$0]  %s856_s2, 4096, %s858_s29, [#allocation3], %s1300_s30, %s1300_s30, %s1301_s4  }
 0x115   :  { %1296 = dma.done.wait [#allocation3], 4096  }
 0x116   :  { %1297 = vsyncadd [#allocation3], 4294963200 }
 0x117   :  { %868 = vsyncpa [#allocation3], 1 }

</bundles_post_ra>
